<compile_context>
chip_gen: v7x
topology: tpu7x:2x2x1
jax: 0.10.0
libtpu: 0.0.40
codegen_flags: <defaults>
</compile_context>

<pallas_src>
import jax
import jax.numpy as jnp
from jax.experimental import pallas as pl
from jax.experimental.pallas import tpu as pltpu


def _normalisation_kernel(scale_ref, bias_ref, img_ref, out_ref):
    # scale_ref / bias_ref: (R, 1) f32 per-row vectors in VMEM
    # img_ref / out_ref:    (R, T) tile in VMEM
    x = img_ref[...].astype(jnp.float32)
    out_ref[...] = (x * scale_ref[...] + bias_ref[...]).astype(out_ref.dtype)


def _per_generation_config():
    """(target_block_bytes, vmem_limit_bytes_or_None) by TPU generation."""
    kind = ""
    try:
        kind = jax.devices()[0].device_kind.lower()
    except Exception:
        pass
    if "v7" in kind or "7x" in kind:
        # 8 MiB blocks: in+out double-buffered = 32 MiB -> raise scoped limit
        # explicitly (physical VMEM on v7x is 64 MiB, not 128 MiB).
        return 8 << 20, 40 << 20
    if "v6" in kind:
        return 4 << 20, None      # 16 MiB double-buffered < 32 MiB default
    return 2 << 20, None          # v5e / unknown: 8 MiB < 16 MiB default


def _best_lane_tile(cols, max_lane_elems):
    """Largest legal lane tile <= max_lane_elems.

    Legal = full `cols`, or a multiple of 128.  Among multiples of 128 we
    prefer one that divides `cols` exactly (no ragged tail block).
    """
    if cols <= max_lane_elems:
        return cols
    cap = (max_lane_elems // 128) * 128
    if cap < 128:
        return cols if cols <= 128 else 128
    for tc in range(cap, 127, -128):
        if cols % tc == 0:
            return tc
    return cap


def _choose_block(rows, cols, dtype, target_bytes):
    """Pick a (R, T) block: lane-dense, ~target_bytes, legal under (8,128)."""
    itemsize = jnp.dtype(dtype).itemsize
    sm = max(8, 32 // itemsize)           # sublane tile: 8 f32 / 16 bf16 / 32 i8

    # 1) Whole array fits in one block.
    if rows * cols * itemsize <= target_bytes:
        return rows, cols

    # 2) Full-width rows (fully contiguous DMAs) with enough rows to fill the
    #    budget.  `rows > sm` is implied here, and the row count computed is
    #    >= sm and < rows, so the block is always legal.
    if cols * sm * itemsize <= target_bytes:
        tr = (target_bytes // (cols * itemsize) // sm) * sm
        return max(sm, min(rows, tr)), cols

    # 3) Rows are few (or the spatial dim is huge): keep all rows resident if
    #    even a 128-lane slab of them fits, otherwise cut rows to budget, then
    #    grow the lane tile as far as the budget allows.
    if rows * 128 * itemsize <= target_bytes:
        tr = rows
    else:
        tr = max(sm, (target_bytes // (128 * itemsize) // sm) * sm)
    tc = _best_lane_tile(cols, max(128, target_bytes // (tr * itemsize)))
    return tr, tc


def normalisation(image: jax.Array, mean: jax.Array, std: jax.Array,
                  *, donate: bool = False, target_bytes: int | None = None
                  ) -> jax.Array:
    """(image - mean[:, None, None]) / std[:, None, None] over NCHW input."""
    N, C, H, W = image.shape
    assert mean.shape == (C,) and std.shape == (C,)

    rows, cols = N * C, H * W

    # Integer images produce fractional/negative values -> promote to f32
    # (matches PyTorch's promotion); floating images keep their dtype.
    out_dtype = image.dtype if jnp.issubdtype(image.dtype, jnp.floating) \
        else jnp.float32

    # Precompute scale/bias in float32 (length C -> per-row length N*C).
    # NOTE: std == 0 yields inf/nan, same as the PyTorch reference.
    inv_std = 1.0 / std.astype(jnp.float32)
    neg_mean_over_std = -mean.astype(jnp.float32) * inv_std
    scale = jnp.broadcast_to(inv_std[None, :], (N, C)).reshape(rows, 1)
    bias = jnp.broadcast_to(neg_mean_over_std[None, :], (N, C)).reshape(rows, 1)

    # Lane-dense 2-D view of the image (free reshape for contiguous NCHW).
    img2 = image.reshape(rows, cols)

    tb, vmem_limit = _per_generation_config()
    if target_bytes is not None:
        tb = target_bytes
    tr, tc = _choose_block(rows, cols, image.dtype, tb)
    grid = (pl.cdiv(rows, tr), pl.cdiv(cols, tc))

    aliases = {}
    if donate and out_dtype == image.dtype:
        aliases = {2: 0}   # reuse the image HBM buffer for the output

    out2 = pl.pallas_call(
        _normalisation_kernel,
        out_shape=jax.ShapeDtypeStruct((rows, cols), out_dtype),
        grid_spec=pltpu.PrefetchScalarGridSpec(
            num_scalar_prefetch=0,
            grid=grid,
            in_specs=[
                # per-row scale / bias: same row-block as the image tile
                pl.BlockSpec((tr, 1), lambda i, j: (i, 0)),
                pl.BlockSpec((tr, 1), lambda i, j: (i, 0)),
                # image tile
                pl.BlockSpec((tr, tc), lambda i, j: (i, j)),
            ],
            out_specs=pl.BlockSpec((tr, tc), lambda i, j: (i, j)),
        ),
        compiler_params=pltpu.CompilerParams(
            dimension_semantics=("parallel", "parallel"),
            vmem_limit_bytes=vmem_limit,
        ),
        input_output_aliases=aliases,
    )(scale, bias, img2)

    return out2.reshape(N, C, H, W)


def _reference(image, mean, std):
    out_dtype = image.dtype if jnp.issubdtype(image.dtype, jnp.floating) \
        else jnp.float32
    m = mean.astype(jnp.float32)[None, :, None, None]
    s = std.astype(jnp.float32)[None, :, None, None]
    return ((image.astype(jnp.float32) - m) / s).astype(out_dtype)


if __name__ == "__main__":
    key = jax.random.PRNGKey(0)
    k_img, k_mean, k_std, k_img2, k_img3 = jax.random.split(key, 5)

    # Primary check: batch=2, channels=4, spatial=16x16 (single block).
    N, C, H, W = 2, 4, 16, 16
    image = jax.random.normal(k_img, (N, C, H, W), dtype=jnp.float32)
    mean = jax.random.normal(k_mean, (C,), dtype=jnp.float32)
    std = jax.random.uniform(k_std, (C,), dtype=jnp.float32, minval=0.5, maxval=1.5)

    out = jax.block_until_ready(normalisation(image, mean, std))
    ref = _reference(image, mean, std)
    assert out.shape == (N, C, H, W)
    assert jnp.allclose(out, ref, atol=1e-5, rtol=1e-5)

    # Secondary check: awkward (non-128-multiple) spatial size -> full-dim block.
    N2, C2, H2, W2 = 1, 3, 10, 13
    image2 = jax.random.normal(k_img2, (N2, C2, H2, W2), dtype=jnp.float32)
    out2 = jax.block_until_ready(normalisation(image2, mean[:C2], std[:C2]))
    ref2 = _reference(image2, mean[:C2], std[:C2])
    assert jnp.allclose(out2, ref2, atol=1e-5, rtol=1e-5)

    # Tiling check: force a tiny block budget so the kernel runs multi-block
    # with a ragged lane tail (cols=660, tc=256), exercising padded blocks.
    N3, C3, H3, W3 = 2, 4, 20, 33
    image3 = jax.random.normal(k_img3, (N3, C3, H3, W3), dtype=jnp.float32)
    out3 = jax.block_until_ready(
        normalisation(image3, mean, std, target_bytes=8 * 1024))
    ref3 = _reference(image3, mean, std)
    assert jnp.allclose(out3, ref3, atol=1e-5, rtol=1e-5)

    print("KERNEL_OK")
</pallas_src>

<mosaic_0001>
module attributes {stable_mosaic.version = 11 : i64} {
  func.func @_normalisation_kernel(%arg0: i32, %arg1: i32, %arg2: memref<8x1xf32, #tpu.memory_space<vmem>>, %arg3: memref<8x1xf32, #tpu.memory_space<vmem>>, %arg4: memref<8x256xf32, #tpu.memory_space<vmem>>, %arg5: memref<8x256xf32, #tpu.memory_space<vmem>>) attributes {dimension_semantics = [#tpu.dimension_semantics<parallel>, #tpu.dimension_semantics<parallel>], iteration_bounds = array<i64: 1, 1>, scalar_prefetch = 0 : i64, scratch_operands = 0 : i64, tpu.core_type = #tpu.core_type<tc>, window_params = [{transform_indices = @transform_0, window_bounds = array<i64: 8, 1>}, {transform_indices = @transform_1, window_bounds = array<i64: 8, 1>}, {transform_indices = @transform_2, window_bounds = array<i64: 8, 256>}, {transform_indices = @transform_3, window_bounds = array<i64: 8, 256>}]} {
    %c0 = arith.constant 0 : index
    %c0_0 = arith.constant 0 : index
    %0 = vector.load %arg4[%c0, %c0_0] : memref<8x256xf32, #tpu.memory_space<vmem>>, vector<8x256xf32>
    %c0_1 = arith.constant 0 : index
    %c0_2 = arith.constant 0 : index
    %1 = vector.load %arg2[%c0_1, %c0_2] : memref<8x1xf32, #tpu.memory_space<vmem>>, vector<8x1xf32>
    %2 = vector.broadcast %1 : vector<8x1xf32> to vector<8x256xf32>
    %3 = arith.mulf %0, %2 : vector<8x256xf32>
    %c0_3 = arith.constant 0 : index
    %c0_4 = arith.constant 0 : index
    %4 = vector.load %arg3[%c0_3, %c0_4] : memref<8x1xf32, #tpu.memory_space<vmem>>, vector<8x1xf32>
    %5 = vector.broadcast %4 : vector<8x1xf32> to vector<8x256xf32>
    %6 = arith.addf %3, %5 : vector<8x256xf32>
    %c0_5 = arith.constant 0 : index
    %c0_6 = arith.constant 0 : index
    %7 = vector.load %arg5[%c0_5, %c0_6] : memref<8x256xf32, #tpu.memory_space<vmem>>, vector<8x256xf32>
    tpu.vector_store %arg5[%c0_5, %c0_6], %6 {strides = array<i32>} : memref<8x256xf32, #tpu.memory_space<vmem>>, vector<8x256xf32>,
    return
  }
  func.func @transform_0(%arg0: i32, %arg1: i32) -> (i32, i32) {
    %c0_i32 = arith.constant 0 : i32
    %c0_i32_0 = arith.constant 0 : i32
    return %arg0, %c0_i32 : i32, i32
  }
  func.func @transform_1(%arg0: i32, %arg1: i32) -> (i32, i32) {
    %c0_i32 = arith.constant 0 : i32
    %c0_i32_0 = arith.constant 0 : i32
    return %arg0, %c0_i32 : i32, i32
  }
  func.func @transform_2(%arg0: i32, %arg1: i32) -> (i32, i32) {
    %c0_i32 = arith.constant 0 : i32
    return %arg0, %arg1 : i32, i32
  }
  func.func @transform_3(%arg0: i32, %arg1: i32) -> (i32, i32) {
    %c0_i32 = arith.constant 0 : i32
    return %arg0, %arg1 : i32, i32
  }
}

</mosaic_0001>

<bundles_post_ra>
// kernel: tpu_custom_call.1
= control target key start
LH: loop header
LB: loop body
LE: loop exit
PB: predicated region body
PF: predicated region fallthrough
CT: control target
= control target key end

     0   :  { %s122_s0 = inlined_call_operand.vmem [shape: f32[8,1], index: 0, kind: input, shape index: {}]   ;;  %s123_s1 = inlined_call_operand.vmem [shape: f32[8,1], index: 1, kind: input, shape index: {}]   ;;  %s124_s2 = inlined_call_operand.vmem [shape: f32[8,256], index: 2, kind: input, shape index: {}]   ;;  %s125_s3 = inlined_call_operand.hbm [shape: f32[8,256], index: 3, kind: output, shape index: {}]  }
   0x1   :  { %v17_v0 = vld [vmem:[%s122_s0] sm:$0xff] }
   0x2   :  { %8 = vsyncpa [#allocation3], 0  ;;  %v76_v1 = vmov 0   ;;  %v25_v2 = vld [vmem:[%s123_s1] sm:$0xff]  ;;  %v16_v5 = vld [vmem:[%s124_s2 + $0x8] sm:$0xff]  ;;  %s77_s20 = smov [#allocation2]  }
   0x3   :  { %51 = vset.pattern.permute.xlu0 %v76_v1  ;;  %v15_v4 = vld [vmem:[%s124_s2] sm:$0xff]  ;;  %s41_s0 = sshll.u32 %s77_s20, 4  ;;  %s42_s0 = int_to_ptr.vmem [resolvable:$true] %s41_s0 }
   0x4   :  { %20 = vperm.xlu0 %51, %v17_v0   ;;  %s52_s1 = scalar_lea.vmem %s42_s0, 256  ;;  %p57_p1 = scmp.lt.s32.totalorder %s42_s0, %s42_s0 }
   0x5   :  { %p53_p0 = scmp.ne.s32.totalorder %s42_s0, %s52_s1  ;;  %p58_p2 = scmp.lt.s32.totalorder %s52_s1, %s52_s1 }
   0x7   :  { %p59_p3 = por %p58_p2, %p57_p1 }
   0x8   :  { %28 = vperm.xlu0 %51, %v25_v2  }
   0x9   :  { %p60_p4 = pnand %p59_p3, %p53_p0 }
  0x83   :  { %v21_v3 = vpop.permute.xlu0 %20 }
  0x84   :  { %v23_v6 = vmul.f32 %v21_v3, %v15_v4  ;;  %v24_v7 = vmul.f32 %v21_v3, %v16_v5 }
  0x87   :  { %v29_v8 = vpop.permute.xlu0 %28 }
  0x88   :  { %v31_v9 = vadd.f32 %v29_v8, %v23_v6  ;;  %v32_v10 = vadd.f32 %v29_v8, %v24_v7 }
  0x8a   :  { %33 = vst [vmem:[#allocation2] sm:$0xff] %v31_v9  ;;  %34 = vst [vmem:[#allocation2 + $0x8] sm:$0xff] %v32_v10 }
  0x8b   :  { %63 = shalt.err (!%p60_p4)
}
  0x8c   :  { %s64_s2 = scalar_lea.hbm %s125_s3, 256 }
  0x8d   :  { %p65_p5 = scmp.ne.s32.totalorder %s125_s3, %s64_s2  ;;  %p68_p6 = scmp.lt.u32.totalorder %s64_s2, %s125_s3 }
  0x8f   :  { %p70_p7 = pnand %p68_p6, %p65_p5 }
  0x91   :  { %73 = shalt.err (!%p70_p7)
}
  0x92   :  { %44 = dma.vmem_to_hbm [thread:$0]  %s42_s0, 256, %s125_s3, [#allocation3]  }
  0x93   :  { %74 = dma.done.wait [#allocation3], 256  }
  0x94   :  { %75 = vsyncadd [#allocation3], 4294967040 }
  0x95   :  { %48 = vsyncpa [#allocation3], 1 }

</bundles_post_ra>
